<compile_context>
chip_gen: v7x
topology: tpu7x:2x2x1
jax: 0.10.0
libtpu: 0.0.40
codegen_flags: <defaults>
</compile_context>

<pallas_src>
import jax
import jax.numpy as jnp
from jax.experimental import pallas as pl
from jax.experimental.pallas import tpu as pltpu

EPS = 1e-5


def hyper_kernel(e1_ref, r_ref, w1_ref, b1_ref, wf_ref, bf_ref,
                 g0_ref, be0_ref, g1_ref, be1_ref, g2_ref, be2_ref,
                 et_ref, bent_ref, out_ref, y_ref):
    B, d_e = e1_ref.shape
    nf = g1_ref.shape[1]
    lf = w1_ref.shape[1] // nf
    to = d_e - lf + 1

    # ---------------- prologue: compute y = relu(bn2(fc(bn1(conv(bn0(e1), fc1(r)))))) once
    @pl.when(pl.program_id(0) == 0)
    def _prologue():
        e1 = e1_ref[...]                                    # (B, d_e)

        # bn0: BatchNorm1d(1) over (B, 1, d_e) -> one mean/var over all B*d_e elems
        n0 = B * d_e
        mu0 = jnp.sum(e1) * (1.0 / n0)
        d0 = e1 - mu0
        var0 = jnp.sum(d0 * d0) * (1.0 / n0)
        x = d0 * jax.lax.rsqrt(var0 + EPS) * g0_ref[...] + be0_ref[...]

        # fc1 fused into ONE matmul; column layout j*nf + f (tap-major)
        k_all = jnp.dot(r_ref[...], w1_ref[...],
                        preferred_element_type=jnp.float32) + b1_ref[...]

        # grouped conv1d (groups = batch) -> (B, to*nf) slab, column t*nf + f.
        # Only d_e distinct x-column broadcasts (deduplicated), not lf*to.
        xb = [jnp.broadcast_to(x[:, c:c + 1], (B, nf)) for c in range(d_e)]
        kj = [k_all[:, j * nf:(j + 1) * nf] for j in range(lf)]
        cols = []
        for t in range(to):
            acc = xb[t] * kj[0]
            for j in range(1, lf):
                acc = acc + xb[t + j] * kj[j]
            cols.append(acc)
        slab = cols[0] if to == 1 else jnp.concatenate(cols, axis=1)   # (B, to*nf)

        # bn1: per-filter stats over batch and positions.
        # One sublane reduction over the slab, then fold the `to` groups.
        n1 = B * to
        bsum = jnp.sum(slab, axis=0, keepdims=True)          # (1, to*nf)
        mu1 = bsum[:, 0:nf]
        for t in range(1, to):
            mu1 = mu1 + bsum[:, t * nf:(t + 1) * nf]
        mu1 = mu1 * (1.0 / n1)                               # (1, nf)
        mu1_t = jnp.concatenate([mu1] * to, axis=1) if to > 1 else mu1
        dd = slab - mu1_t
        vsum = jnp.sum(dd * dd, axis=0, keepdims=True)       # (1, to*nf)
        var1 = vsum[:, 0:nf]
        for t in range(1, to):
            var1 = var1 + vsum[:, t * nf:(t + 1) * nf]
        var1 = var1 * (1.0 / n1)
        scale1 = jax.lax.rsqrt(var1 + EPS) * g1_ref[...]     # (1, nf)
        scale1_t = jnp.concatenate([scale1] * to, axis=1) if to > 1 else scale1
        beta1_t = (jnp.concatenate([be1_ref[...]] * to, axis=1)
                   if to > 1 else be1_ref[...])
        h = dd * scale1_t + beta1_t                          # (B, to*nf)

        # fc fused into ONE matmul: (B, to*nf) @ (to*nf, d_e)
        y = jnp.dot(h, wf_ref[...],
                    preferred_element_type=jnp.float32) + bf_ref[...]

        # bn2 (per-feature, batch stats) + ReLU
        mu2 = jnp.sum(y, axis=0, keepdims=True) * (1.0 / B)
        d2 = y - mu2
        var2 = jnp.sum(d2 * d2, axis=0, keepdims=True) * (1.0 / B)
        y = d2 * jax.lax.rsqrt(var2 + EPS) * g2_ref[...] + be2_ref[...]
        y_ref[...] = jnp.maximum(y, 0.0)                     # persists across tiles

    # ---------------- per entity tile: score + bias + sigmoid
    logits = jnp.dot(y_ref[...], et_ref[...],
                     preferred_element_type=jnp.float32) + bent_ref[...]
    # If the sigmoid tail ever binds at huge N_ent, use
    # pl.reciprocal(1 + exp(-x), approx=True) or return logits (BCE-with-logits).
    out_ref[...] = jax.nn.sigmoid(logits)


def hyper_forward(e1, r, p, *, tile_n=2048):
    """HypER forward in one Pallas call, tiled over the entity dimension."""
    B, d_e = e1.shape
    n_ent = p["Et"].shape[1]
    # Lane-dense entity tile (multiple of 128) streamed/double-buffered through
    # VMEM; 2048 fits comfortably within v5e/v6e/v7x scoped-VMEM defaults.
    tile_n = n_ent if n_ent <= tile_n else tile_n
    grid = (pl.cdiv(n_ent, tile_n),)

    def resident(a):
        # full-array block, constant index -> stays resident in VMEM across tiles
        return pl.BlockSpec(a.shape, lambda n: (0, 0))

    inputs = (e1, r, p["w1"], p["b1"], p["wf"], p["bf"],
              p["g0"], p["be0"], p["g1"], p["be1"], p["g2"], p["be2"],
              p["Et"], p["bent"])
    in_specs = [resident(a) for a in inputs[:12]] + [
        pl.BlockSpec((d_e, tile_n), lambda n: (0, n)),       # Et tile
        pl.BlockSpec((1, tile_n), lambda n: (0, n)),         # entity bias tile
    ]
    grid_spec = pltpu.PrefetchScalarGridSpec(
        num_scalar_prefetch=0,
        grid=grid,
        in_specs=in_specs,
        out_specs=pl.BlockSpec((B, tile_n), lambda n: (0, n)),
        scratch_shapes=[pltpu.VMEM((B, d_e), jnp.float32)],  # persistent y
    )
    return pl.pallas_call(
        hyper_kernel,
        out_shape=jax.ShapeDtypeStruct((B, n_ent), jnp.float32),
        grid_spec=grid_spec,
        compiler_params=pltpu.CompilerParams(
            # prologue is guarded by program_id==0 + persistent scratch, so the
            # entity axis must be "arbitrary" (sequential).  On v7x, recompute
            # the prologue per tile instead and mark this axis "parallel".
            dimension_semantics=("arbitrary",),
        ),
    )(*inputs)


def make_weights(key, num_entities, num_relations, d_e, d_r, nf, lf):
    """Deterministic synthetic init mirroring the torch module's shapes."""
    to = d_e - lf + 1
    k0, k1, k2, k3, k4, k5 = jax.random.split(key, 6)
    # xavier_normal_ for the embedding tables (module.init())
    E = jax.random.normal(k0, (num_entities, d_e), jnp.float32) * jnp.sqrt(2.0 / (num_entities + d_e))
    R = jax.random.normal(k1, (num_relations, d_r), jnp.float32) * jnp.sqrt(2.0 / (num_relations + d_r))
    # torch.nn.Linear default init: U(-1/sqrt(fan_in), 1/sqrt(fan_in))
    fc1_out, fc_in = nf * lf, nf * to
    lim1 = 1.0 / jnp.sqrt(jnp.float32(d_r))
    W1 = jax.random.uniform(k2, (fc1_out, d_r), jnp.float32, -lim1, lim1)
    b1 = jax.random.uniform(k3, (fc1_out,), jnp.float32, -lim1, lim1)
    limf = 1.0 / jnp.sqrt(jnp.float32(fc_in))
    Wf = jax.random.uniform(k4, (d_e, fc_in), jnp.float32, -limf, limf)
    bf = jax.random.uniform(k5, (d_e,), jnp.float32, -limf, limf)
    b_ent = jnp.zeros((num_entities,), jnp.float32)          # register_parameter('b', zeros)

    raw = dict(E=E, R=R, W1=W1, b1=b1, Wf=Wf, bf=bf, b_ent=b_ent)
    # Kernel-friendly FLAT 2D layouts (pure one-time glue):
    #   w1[d, j*nf+f] = W1[f*lf+j, d]     -> fused fc1 matmul, tap-major columns
    #   wf[t*nf+f, d] = Wf[d, f*to+t]     -> fused fc matmul on the (B, to*nf) slab
    p = dict(
        w1=W1.reshape(nf, lf, d_r).transpose(2, 1, 0).reshape(d_r, lf * nf),
        b1=b1.reshape(nf, lf).T.reshape(1, lf * nf),
        wf=Wf.reshape(d_e, nf, to).transpose(2, 1, 0).reshape(to * nf, d_e),
        bf=bf.reshape(1, d_e),
        # For v6e/v7x, cast Et to bf16 (halves dominant traffic); kept f32 here
        # so the check against the f32 reference stays at ~1e-5.
        Et=E.T,                                              # (d_e, N_ent)
        bent=b_ent.reshape(1, num_entities),
        # BatchNorm affine params at torch defaults (weight=1, bias=0)
        g0=jnp.ones((1, 1), jnp.float32), be0=jnp.zeros((1, 1), jnp.float32),
        g1=jnp.ones((1, nf), jnp.float32), be1=jnp.zeros((1, nf), jnp.float32),
        g2=jnp.ones((1, d_e), jnp.float32), be2=jnp.zeros((1, d_e), jnp.float32),
    )
    return raw, p


def hyper_ref(e1, r, raw, nf, lf):
    """Plain-JAX reference mirroring the PyTorch forward (training-mode BN)."""
    E, W1, b1, Wf, bf, b_ent = raw["E"], raw["W1"], raw["b1"], raw["Wf"], raw["bf"], raw["b_ent"]
    B, d_e = e1.shape
    to = d_e - lf + 1
    mu = e1.mean(); var = ((e1 - mu) ** 2).mean()
    x = (e1 - mu) / jnp.sqrt(var + EPS)
    k = (r @ W1.T + b1).reshape(B, nf, lf)
    conv = jnp.zeros((B, nf, to), jnp.float32)
    for j in range(lf):
        conv = conv + x[:, None, j:j + to] * k[:, :, j:j + 1]
    mu1 = conv.mean(axis=(0, 2), keepdims=True)
    var1 = ((conv - mu1) ** 2).mean(axis=(0, 2), keepdims=True)
    conv = (conv - mu1) / jnp.sqrt(var1 + EPS)
    h = conv.reshape(B, nf * to)
    y = h @ Wf.T + bf
    mu2 = y.mean(axis=0); var2 = ((y - mu2) ** 2).mean(axis=0)
    y = (y - mu2) / jnp.sqrt(var2 + EPS)
    y = jnp.maximum(y, 0.0)
    return jax.nn.sigmoid(y @ E.T + b_ent)


if __name__ == "__main__":
    d_e, d_r, nf, lf = 5, 5, 32, 3
    num_entities, num_relations, B = 128, 16, 8

    key = jax.random.PRNGKey(0)
    kw, ke, kr = jax.random.split(key, 3)
    raw, params = make_weights(kw, num_entities, num_relations, d_e, d_r, nf, lf)

    # forward() receives already-embedded e1 / r (shapes (B, d_e), (B, d_r))
    e_idx = jax.random.randint(ke, (B,), 0, num_entities)
    r_idx = jax.random.randint(kr, (B,), 0, num_relations)
    e1 = raw["E"][e_idx]
    r = raw["R"][r_idx]

    out = hyper_forward(e1, r, params)
    out = jax.block_until_ready(out)

    ref = hyper_ref(e1, r, raw, nf, lf)
    assert out.shape == (B, num_entities)
    assert bool(jnp.max(jnp.abs(out - ref)) < 2e-5), "kernel/ref mismatch"

    # TODO(synk): BCELoss and BatchNorm running-stat updates are training-side
    # state, not part of the returned forward value; not implemented in-kernel.
    print("KERNEL_OK")
</pallas_src>

<mosaic_0001>
module attributes {stable_mosaic.version = 11 : i64} {
  func.func @hyper_kernel(%arg0: i32, %arg1: memref<8x5xf32, #tpu.memory_space<vmem>>, %arg2: memref<8x5xf32, #tpu.memory_space<vmem>>, %arg3: memref<5x96xf32, #tpu.memory_space<vmem>>, %arg4: memref<1x96xf32, #tpu.memory_space<vmem>>, %arg5: memref<96x5xf32, #tpu.memory_space<vmem>>, %arg6: memref<1x5xf32, #tpu.memory_space<vmem>>, %arg7: memref<1x1xf32, #tpu.memory_space<vmem>>, %arg8: memref<1x1xf32, #tpu.memory_space<vmem>>, %arg9: memref<1x32xf32, #tpu.memory_space<vmem>>, %arg10: memref<1x32xf32, #tpu.memory_space<vmem>>, %arg11: memref<1x5xf32, #tpu.memory_space<vmem>>, %arg12: memref<1x5xf32, #tpu.memory_space<vmem>>, %arg13: memref<5x128xf32, #tpu.memory_space<vmem>>, %arg14: memref<1x128xf32, #tpu.memory_space<vmem>>, %arg15: memref<8x128xf32, #tpu.memory_space<vmem>>, %arg16: memref<8x5xf32, #tpu.memory_space<vmem>>) attributes {dimension_semantics = [#tpu.dimension_semantics<arbitrary>], iteration_bounds = array<i64: 1>, scalar_prefetch = 0 : i64, scratch_operands = 1 : i64, tpu.core_type = #tpu.core_type<tc>, window_params = [{pipeline_mode = #tpu.pipeline_mode<synchronous>, transform_indices = @transform_0, window_bounds = array<i64: 8, 5>}, {pipeline_mode = #tpu.pipeline_mode<synchronous>, transform_indices = @transform_1, window_bounds = array<i64: 8, 5>}, {pipeline_mode = #tpu.pipeline_mode<synchronous>, transform_indices = @transform_2, window_bounds = array<i64: 5, 96>}, {pipeline_mode = #tpu.pipeline_mode<synchronous>, transform_indices = @transform_3, window_bounds = array<i64: 1, 96>}, {pipeline_mode = #tpu.pipeline_mode<synchronous>, transform_indices = @transform_4, window_bounds = array<i64: 96, 5>}, {pipeline_mode = #tpu.pipeline_mode<synchronous>, transform_indices = @transform_5, window_bounds = array<i64: 1, 5>}, {pipeline_mode = #tpu.pipeline_mode<synchronous>, transform_indices = @transform_6, window_bounds = array<i64: 1, 1>}, {pipeline_mode = #tpu.pipeline_mode<synchronous>, transform_indices = @transform_7, window_bounds = array<i64: 1, 1>}, {pipeline_mode = #tpu.pipeline_mode<synchronous>, transform_indices = @transform_8, window_bounds = array<i64: 1, 32>}, {pipeline_mode = #tpu.pipeline_mode<synchronous>, transform_indices = @transform_9, window_bounds = array<i64: 1, 32>}, {pipeline_mode = #tpu.pipeline_mode<synchronous>, transform_indices = @transform_10, window_bounds = array<i64: 1, 5>}, {pipeline_mode = #tpu.pipeline_mode<synchronous>, transform_indices = @transform_11, window_bounds = array<i64: 1, 5>}, {transform_indices = @transform_12, window_bounds = array<i64: 5, 128>}, {transform_indices = @transform_13, window_bounds = array<i64: 1, 128>}, {transform_indices = @transform_14, window_bounds = array<i64: 8, 128>}]} {
    %c0_i32 = arith.constant 0 : i32
    %0 = arith.cmpi eq, %arg0, %c0_i32 : i32
    %1 = arith.extui %0 : i1 to i32
    %c0_i32_0 = arith.constant 0 : i32
    %2 = arith.cmpi ne, %1, %c0_i32_0 : i32
    scf.if %2 {
      %c0_9 = arith.constant 0 : index
      %c0_10 = arith.constant 0 : index
      %15 = vector.load %arg1[%c0_9, %c0_10] : memref<8x5xf32, #tpu.memory_space<vmem>>, vector<8x5xf32>
      %16 = vector.shape_cast %15 : vector<8x5xf32> to vector<1x8x5xf32>
      %cst_11 = arith.constant dense<0.000000e+00> : vector<1xf32>
      %17 = vector.multi_reduction <add>, %16, %cst_11 [1, 2] : vector<1x8x5xf32> to vector<1xf32>
      %18 = vector.shape_cast %17 : vector<1xf32> to vector<1x1x1xf32>
      %19 = vector.extract %18[0, 0, 0] : f32 from vector<1x1x1xf32>
      %cst_12 = arith.constant 2.500000e-02 : f32
      %20 = arith.mulf %19, %cst_12 : f32
      %21 = vector.broadcast %20 : f32 to vector<8x5xf32>
      %22 = arith.subf %15, %21 : vector<8x5xf32>
      %23 = arith.mulf %22, %22 : vector<8x5xf32>
      %24 = vector.shape_cast %23 : vector<8x5xf32> to vector<1x8x5xf32>
      %cst_13 = arith.constant dense<0.000000e+00> : vector<1xf32>
      %25 = vector.multi_reduction <add>, %24, %cst_13 [1, 2] : vector<1x8x5xf32> to vector<1xf32>
      %26 = vector.shape_cast %25 : vector<1xf32> to vector<1x1x1xf32>
      %27 = vector.extract %26[0, 0, 0] : f32 from vector<1x1x1xf32>
      %cst_14 = arith.constant 2.500000e-02 : f32
      %28 = arith.mulf %27, %cst_14 : f32
      %cst_15 = arith.constant 9.99999974E-6 : f32
      %29 = arith.addf %28, %cst_15 : f32
      %30 = math.rsqrt %29 : f32
      %31 = vector.broadcast %30 : f32 to vector<8x5xf32>
      %32 = arith.mulf %22, %31 : vector<8x5xf32>
      %c0_16 = arith.constant 0 : index
      %c0_17 = arith.constant 0 : index
      %33 = vector.load %arg7[%c0_16, %c0_17] : memref<1x1xf32, #tpu.memory_space<vmem>>, vector<1x1xf32>
      %34 = vector.broadcast %33 : vector<1x1xf32> to vector<8x5xf32>
      %35 = arith.mulf %32, %34 : vector<8x5xf32>
      %c0_18 = arith.constant 0 : index
      %c0_19 = arith.constant 0 : index
      %36 = vector.load %arg8[%c0_18, %c0_19] : memref<1x1xf32, #tpu.memory_space<vmem>>, vector<1x1xf32>
      %37 = vector.broadcast %36 : vector<1x1xf32> to vector<8x5xf32>
      %38 = arith.addf %35, %37 : vector<8x5xf32>
      %c0_20 = arith.constant 0 : index
      %c0_21 = arith.constant 0 : index
      %39 = vector.load %arg2[%c0_20, %c0_21] : memref<8x5xf32, #tpu.memory_space<vmem>>, vector<8x5xf32>
      %c0_22 = arith.constant 0 : index
      %c0_23 = arith.constant 0 : index
      %40 = vector.load %arg3[%c0_22, %c0_23] : memref<5x96xf32, #tpu.memory_space<vmem>>, vector<5x96xf32>
      %cst_24 = arith.constant dense<0.000000e+00> : vector<8x96xf32>
      %41 = tpu.matmul %39, %40, %cst_24 {dimension_numbers = #tpu.dot_dimension_numbers<[1], [0], [0], [1], [0, 0, 1, 1], [], []>} : vector<8x5xf32>, vector<5x96xf32>, vector<8x96xf32> -> vector<8x96xf32>
      %c0_25 = arith.constant 0 : index
      %c0_26 = arith.constant 0 : index
      %42 = vector.load %arg4[%c0_25, %c0_26] : memref<1x96xf32, #tpu.memory_space<vmem>>, vector<1x96xf32>
      %43 = vector.broadcast %42 : vector<1x96xf32> to vector<8x96xf32>
      %44 = arith.addf %41, %43 : vector<8x96xf32>
      %45 = vector.extract_strided_slice %38 {offsets = [0, 0], sizes = [8, 1], strides = [1, 1]} : vector<8x5xf32> to vector<8x1xf32>
      %46 = vector.shape_cast %45 : vector<8x1xf32> to vector<8x1xf32>
      %47 = vector.broadcast %46 : vector<8x1xf32> to vector<8x32xf32>
      %48 = vector.extract_strided_slice %38 {offsets = [0, 1], sizes = [8, 1], strides = [1, 1]} : vector<8x5xf32> to vector<8x1xf32>
      %49 = vector.shape_cast %48 : vector<8x1xf32> to vector<8x1xf32>
      %50 = vector.broadcast %49 : vector<8x1xf32> to vector<8x32xf32>
      %51 = vector.extract_strided_slice %38 {offsets = [0, 2], sizes = [8, 1], strides = [1, 1]} : vector<8x5xf32> to vector<8x1xf32>
      %52 = vector.shape_cast %51 : vector<8x1xf32> to vector<8x1xf32>
      %53 = vector.broadcast %52 : vector<8x1xf32> to vector<8x32xf32>
      %54 = vector.extract_strided_slice %38 {offsets = [0, 3], sizes = [8, 1], strides = [1, 1]} : vector<8x5xf32> to vector<8x1xf32>
      %55 = vector.shape_cast %54 : vector<8x1xf32> to vector<8x1xf32>
      %56 = vector.broadcast %55 : vector<8x1xf32> to vector<8x32xf32>
      %57 = vector.extract_strided_slice %38 {offsets = [0, 4], sizes = [8, 1], strides = [1, 1]} : vector<8x5xf32> to vector<8x1xf32>
      %58 = vector.shape_cast %57 : vector<8x1xf32> to vector<8x1xf32>
      %59 = vector.broadcast %58 : vector<8x1xf32> to vector<8x32xf32>
      %60 = vector.extract_strided_slice %44 {offsets = [0, 0], sizes = [8, 32], strides = [1, 1]} : vector<8x96xf32> to vector<8x32xf32>
      %61 = vector.extract_strided_slice %44 {offsets = [0, 32], sizes = [8, 32], strides = [1, 1]} : vector<8x96xf32> to vector<8x32xf32>
      %62 = vector.extract_strided_slice %44 {offsets = [0, 64], sizes = [8, 32], strides = [1, 1]} : vector<8x96xf32> to vector<8x32xf32>
      %63 = arith.mulf %47, %60 : vector<8x32xf32>
      %64 = arith.mulf %50, %61 : vector<8x32xf32>
      %65 = arith.addf %63, %64 : vector<8x32xf32>
      %66 = arith.mulf %53, %62 : vector<8x32xf32>
      %67 = arith.addf %65, %66 : vector<8x32xf32>
      %68 = arith.mulf %50, %60 : vector<8x32xf32>
      %69 = arith.mulf %53, %61 : vector<8x32xf32>
      %70 = arith.addf %68, %69 : vector<8x32xf32>
      %71 = arith.mulf %56, %62 : vector<8x32xf32>
      %72 = arith.addf %70, %71 : vector<8x32xf32>
      %73 = arith.mulf %53, %60 : vector<8x32xf32>
      %74 = arith.mulf %56, %61 : vector<8x32xf32>
      %75 = arith.addf %73, %74 : vector<8x32xf32>
      %76 = arith.mulf %59, %62 : vector<8x32xf32>
      %77 = arith.addf %75, %76 : vector<8x32xf32>
      %78 = tpu.concatenate %67, %72, %77 in 1 : vector<8x32xf32>, vector<8x32xf32>, vector<8x32xf32> -> vector<8x96xf32>
      %cst_27 = arith.constant dense<0.000000e+00> : vector<96xf32>
      %79 = vector.multi_reduction <add>, %78, %cst_27 [0] : vector<8x96xf32> to vector<96xf32>
      %80 = vector.shape_cast %79 : vector<96xf32> to vector<1x96xf32>
      %81 = vector.extract_strided_slice %80 {offsets = [0, 0], sizes = [1, 32], strides = [1, 1]} : vector<1x96xf32> to vector<1x32xf32>
      %82 = vector.extract_strided_slice %80 {offsets = [0, 32], sizes = [1, 32], strides = [1, 1]} : vector<1x96xf32> to vector<1x32xf32>
      %83 = arith.addf %81, %82 : vector<1x32xf32>
      %84 = vector.extract_strided_slice %80 {offsets = [0, 64], sizes = [1, 32], strides = [1, 1]} : vector<1x96xf32> to vector<1x32xf32>
      %85 = arith.addf %83, %84 : vector<1x32xf32>
      %cst_28 = arith.constant 0.0416666679 : f32
      %86 = vector.broadcast %cst_28 : f32 to vector<1x32xf32>
      %87 = arith.mulf %85, %86 : vector<1x32xf32>
      %88 = tpu.concatenate %87, %87, %87 in 1 : vector<1x32xf32>, vector<1x32xf32>, vector<1x32xf32> -> vector<1x96xf32>
      %89 = vector.broadcast %88 : vector<1x96xf32> to vector<8x96xf32>
      %90 = arith.subf %78, %89 : vector<8x96xf32>
      %91 = arith.mulf %90, %90 : vector<8x96xf32>
      %cst_29 = arith.constant dense<0.000000e+00> : vector<96xf32>
      %92 = vector.multi_reduction <add>, %91, %cst_29 [0] : vector<8x96xf32> to vector<96xf32>
      %93 = vector.shape_cast %92 : vector<96xf32> to vector<1x96xf32>
      %94 = vector.extract_strided_slice %93 {offsets = [0, 0], sizes = [1, 32], strides = [1, 1]} : vector<1x96xf32> to vector<1x32xf32>
      %95 = vector.extract_strided_slice %93 {offsets = [0, 32], sizes = [1, 32], strides = [1, 1]} : vector<1x96xf32> to vector<1x32xf32>
      %96 = arith.addf %94, %95 : vector<1x32xf32>
      %97 = vector.extract_strided_slice %93 {offsets = [0, 64], sizes = [1, 32], strides = [1, 1]} : vector<1x96xf32> to vector<1x32xf32>
      %98 = arith.addf %96, %97 : vector<1x32xf32>
      %cst_30 = arith.constant 0.0416666679 : f32
      %99 = vector.broadcast %cst_30 : f32 to vector<1x32xf32>
      %100 = arith.mulf %98, %99 : vector<1x32xf32>
      %cst_31 = arith.constant 9.99999974E-6 : f32
      %101 = vector.broadcast %cst_31 : f32 to vector<1x32xf32>
      %102 = arith.addf %100, %101 : vector<1x32xf32>
      %103 = math.rsqrt %102 : vector<1x32xf32>
      %c0_32 = arith.constant 0 : index
      %c0_33 = arith.constant 0 : index
      %104 = vector.load %arg9[%c0_32, %c0_33] : memref<1x32xf32, #tpu.memory_space<vmem>>, vector<1x32xf32>
      %105 = arith.mulf %103, %104 : vector<1x32xf32>
      %106 = tpu.concatenate %105, %105, %105 in 1 : vector<1x32xf32>, vector<1x32xf32>, vector<1x32xf32> -> vector<1x96xf32>
      %c0_34 = arith.constant 0 : index
      %c0_35 = arith.constant 0 : index
      %107 = vector.load %arg10[%c0_34, %c0_35] : memref<1x32xf32, #tpu.memory_space<vmem>>, vector<1x32xf32>
      %108 = tpu.concatenate %107, %107, %107 in 1 : vector<1x32xf32>, vector<1x32xf32>, vector<1x32xf32> -> vector<1x96xf32>
      %109 = vector.broadcast %106 : vector<1x96xf32> to vector<8x96xf32>
      %110 = arith.mulf %90, %109 : vector<8x96xf32>
      %111 = vector.broadcast %108 : vector<1x96xf32> to vector<8x96xf32>
      %112 = arith.addf %110, %111 : vector<8x96xf32>
      %c0_36 = arith.constant 0 : index
      %c0_37 = arith.constant 0 : index
      %113 = vector.load %arg5[%c0_36, %c0_37] : memref<96x5xf32, #tpu.memory_space<vmem>>, vector<96x5xf32>
      %cst_38 = arith.constant dense<0.000000e+00> : vector<8x5xf32>
      %114 = tpu.matmul %112, %113, %cst_38 {dimension_numbers = #tpu.dot_dimension_numbers<[1], [0], [0], [1], [0, 0, 1, 1], [], []>} : vector<8x96xf32>, vector<96x5xf32>, vector<8x5xf32> -> vector<8x5xf32>
      %c0_39 = arith.constant 0 : index
      %c0_40 = arith.constant 0 : index
      %115 = vector.load %arg6[%c0_39, %c0_40] : memref<1x5xf32, #tpu.memory_space<vmem>>, vector<1x5xf32>
      %116 = vector.broadcast %115 : vector<1x5xf32> to vector<8x5xf32>
      %117 = arith.addf %114, %116 : vector<8x5xf32>
      %cst_41 = arith.constant dense<0.000000e+00> : vector<5xf32>
      %118 = vector.multi_reduction <add>, %117, %cst_41 [0] : vector<8x5xf32> to vector<5xf32>
      %119 = vector.shape_cast %118 : vector<5xf32> to vector<1x5xf32>
      %cst_42 = arith.constant 1.250000e-01 : f32
      %120 = vector.broadcast %cst_42 : f32 to vector<1x5xf32>
      %121 = arith.mulf %119, %120 : vector<1x5xf32>
      %122 = vector.broadcast %121 : vector<1x5xf32> to vector<8x5xf32>
      %123 = arith.subf %117, %122 : vector<8x5xf32>
      %124 = arith.mulf %123, %123 : vector<8x5xf32>
      %cst_43 = arith.constant dense<0.000000e+00> : vector<5xf32>
      %125 = vector.multi_reduction <add>, %124, %cst_43 [0] : vector<8x5xf32> to vector<5xf32>
      %126 = vector.shape_cast %125 : vector<5xf32> to vector<1x5xf32>
      %cst_44 = arith.constant 1.250000e-01 : f32
      %127 = vector.broadcast %cst_44 : f32 to vector<1x5xf32>
      %128 = arith.mulf %126, %127 : vector<1x5xf32>
      %cst_45 = arith.constant 9.99999974E-6 : f32
      %129 = vector.broadcast %cst_45 : f32 to vector<1x5xf32>
      %130 = arith.addf %128, %129 : vector<1x5xf32>
      %131 = math.rsqrt %130 : vector<1x5xf32>
      %132 = vector.broadcast %131 : vector<1x5xf32> to vector<8x5xf32>
      %133 = arith.mulf %123, %132 : vector<8x5xf32>
      %c0_46 = arith.constant 0 : index
      %c0_47 = arith.constant 0 : index
      %134 = vector.load %arg11[%c0_46, %c0_47] : memref<1x5xf32, #tpu.memory_space<vmem>>, vector<1x5xf32>
      %135 = vector.broadcast %134 : vector<1x5xf32> to vector<8x5xf32>
      %136 = arith.mulf %133, %135 : vector<8x5xf32>
      %c0_48 = arith.constant 0 : index
      %c0_49 = arith.constant 0 : index
      %137 = vector.load %arg12[%c0_48, %c0_49] : memref<1x5xf32, #tpu.memory_space<vmem>>, vector<1x5xf32>
      %138 = vector.broadcast %137 : vector<1x5xf32> to vector<8x5xf32>
      %139 = arith.addf %136, %138 : vector<8x5xf32>
      %cst_50 = arith.constant 0.000000e+00 : f32
      %140 = vector.broadcast %cst_50 : f32 to vector<8x5xf32>
      %141 = arith.maximumf %139, %140 : vector<8x5xf32>
      %c0_51 = arith.constant 0 : index
      %c0_52 = arith.constant 0 : index
      %142 = vector.load %arg16[%c0_51, %c0_52] : memref<8x5xf32, #tpu.memory_space<vmem>>, vector<8x5xf32>
      tpu.vector_store %arg16[%c0_51, %c0_52], %141 {strides = array<i32>} : memref<8x5xf32, #tpu.memory_space<vmem>>, vector<8x5xf32>,
    } else {
    }
    %c0 = arith.constant 0 : index
    %c0_1 = arith.constant 0 : index
    %3 = vector.load %arg16[%c0, %c0_1] : memref<8x5xf32, #tpu.memory_space<vmem>>, vector<8x5xf32>
    %c0_2 = arith.constant 0 : index
    %c0_3 = arith.constant 0 : index
    %4 = vector.load %arg13[%c0_2, %c0_3] : memref<5x128xf32, #tpu.memory_space<vmem>>, vector<5x128xf32>
    %cst = arith.constant dense<0.000000e+00> : vector<8x128xf32>
    %5 = tpu.matmul %3, %4, %cst {dimension_numbers = #tpu.dot_dimension_numbers<[1], [0], [0], [1], [0, 0, 1, 1], [], []>} : vector<8x5xf32>, vector<5x128xf32>, vector<8x128xf32> -> vector<8x128xf32>
    %c0_4 = arith.constant 0 : index
    %c0_5 = arith.constant 0 : index
    %6 = vector.load %arg14[%c0_4, %c0_5] : memref<1x128xf32, #tpu.memory_space<vmem>>, vector<1x128xf32>
    %7 = vector.broadcast %6 : vector<1x128xf32> to vector<8x128xf32>
    %8 = arith.addf %5, %7 : vector<8x128xf32>
    %9 = arith.negf %8 : vector<8x128xf32>
    %10 = math.exp %9 : vector<8x128xf32>
    %cst_6 = arith.constant 1.000000e+00 : f32
    %11 = vector.broadcast %cst_6 : f32 to vector<8x128xf32>
    %12 = arith.addf %11, %10 : vector<8x128xf32>
    %13 = arith.divf %11, %12 : vector<8x128xf32>
    %c0_7 = arith.constant 0 : index
    %c0_8 = arith.constant 0 : index
    %14 = vector.load %arg15[%c0_7, %c0_8] : memref<8x128xf32, #tpu.memory_space<vmem>>, vector<8x128xf32>
    tpu.vector_store %arg15[%c0_7, %c0_8], %13 {strides = array<i32>} : memref<8x128xf32, #tpu.memory_space<vmem>>, vector<8x128xf32>,
    return
  }
  func.func @transform_0(%arg0: i32) -> (i32, i32) {
    %c0_i32 = arith.constant 0 : i32
    %c0_i32_0 = arith.constant 0 : i32
    %c0_i32_1 = arith.constant 0 : i32
    return %c0_i32, %c0_i32_0 : i32, i32
  }
  func.func @transform_1(%arg0: i32) -> (i32, i32) {
    %c0_i32 = arith.constant 0 : i32
    %c0_i32_0 = arith.constant 0 : i32
    %c0_i32_1 = arith.constant 0 : i32
    return %c0_i32, %c0_i32_0 : i32, i32
  }
  func.func @transform_2(%arg0: i32) -> (i32, i32) {
    %c0_i32 = arith.constant 0 : i32
    %c0_i32_0 = arith.constant 0 : i32
    %c0_i32_1 = arith.constant 0 : i32
    return %c0_i32, %c0_i32_0 : i32, i32
  }
  func.func @transform_3(%arg0: i32) -> (i32, i32) {
    %c0_i32 = arith.constant 0 : i32
    %c0_i32_0 = arith.constant 0 : i32
    %c0_i32_1 = arith.constant 0 : i32
    return %c0_i32, %c0_i32_0 : i32, i32
  }
  func.func @transform_4(%arg0: i32) -> (i32, i32) {
    %c0_i32 = arith.constant 0 : i32
    %c0_i32_0 = arith.constant 0 : i32
    %c0_i32_1 = arith.constant 0 : i32
    return %c0_i32, %c0_i32_0 : i32, i32
  }
  func.func @transform_5(%arg0: i32) -> (i32, i32) {
    %c0_i32 = arith.constant 0 : i32
    %c0_i32_0 = arith.constant 0 : i32
    %c0_i32_1 = arith.constant 0 : i32
    return %c0_i32, %c0_i32_0 : i32, i32
  }
  func.func @transform_6(%arg0: i32) -> (i32, i32) {
    %c0_i32 = arith.constant 0 : i32
    %c0_i32_0 = arith.constant 0 : i32
    %c0_i32_1 = arith.constant 0 : i32
    return %c0_i32, %c0_i32_0 : i32, i32
  }
  func.func @transform_7(%arg0: i32) -> (i32, i32) {
    %c0_i32 = arith.constant 0 : i32
    %c0_i32_0 = arith.constant 0 : i32
    %c0_i32_1 = arith.constant 0 : i32
    return %c0_i32, %c0_i32_0 : i32, i32
  }
  func.func @transform_8(%arg0: i32) -> (i32, i32) {
    %c0_i32 = arith.constant 0 : i32
    %c0_i32_0 = arith.constant 0 : i32
    %c0_i32_1 = arith.constant 0 : i32
    return %c0_i32, %c0_i32_0 : i32, i32
  }
  func.func @transform_9(%arg0: i32) -> (i32, i32) {
    %c0_i32 = arith.constant 0 : i32
    %c0_i32_0 = arith.constant 0 : i32
    %c0_i32_1 = arith.constant 0 : i32
    return %c0_i32, %c0_i32_0 : i32, i32
  }
  func.func @transform_10(%arg0: i32) -> (i32, i32) {
    %c0_i32 = arith.constant 0 : i32
    %c0_i32_0 = arith.constant 0 : i32
    %c0_i32_1 = arith.constant 0 : i32
    return %c0_i32, %c0_i32_0 : i32, i32
  }
  func.func @transform_11(%arg0: i32) -> (i32, i32) {
    %c0_i32 = arith.constant 0 : i32
    %c0_i32_0 = arith.constant 0 : i32
    %c0_i32_1 = arith.constant 0 : i32
    return %c0_i32, %c0_i32_0 : i32, i32
  }
  func.func @transform_12(%arg0: i32) -> (i32, i32) {
    %c0_i32 = arith.constant 0 : i32
    %c0_i32_0 = arith.constant 0 : i32
    return %c0_i32, %arg0 : i32, i32
  }
  func.func @transform_13(%arg0: i32) -> (i32, i32) {
    %c0_i32 = arith.constant 0 : i32
    %c0_i32_0 = arith.constant 0 : i32
    return %c0_i32, %arg0 : i32, i32
  }
  func.func @transform_14(%arg0: i32) -> (i32, i32) {
    %c0_i32 = arith.constant 0 : i32
    %c0_i32_0 = arith.constant 0 : i32
    return %c0_i32, %arg0 : i32, i32
  }
}

</mosaic_0001>

<bundles_post_ra>
// kernel: tpu_custom_call.1
= control target key start
LH: loop header
LB: loop body
LE: loop exit
PB: predicated region body
PF: predicated region fallthrough
CT: control target
= control target key end

     0   :  { %s958_s0 = inlined_call_operand.vmem [shape: f32[8,5], index: 0, kind: input, shape index: {}]   ;;  %s959_s1 = inlined_call_operand.vmem [shape: f32[8,5], index: 1, kind: input, shape index: {}]   ;;  %s960_s2 = inlined_call_operand.vmem [shape: f32[5,96], index: 2, kind: input, shape index: {}]   ;;  %s961_s3 = inlined_call_operand.vmem [shape: f32[1,96], index: 3, kind: input, shape index: {}]   ;;  %s962_s4 = inlined_call_operand.vmem [shape: f32[96,5], index: 4, kind: input, shape index: {}]   ;;  %s963_s5 = inlined_call_operand.vmem [shape: f32[1,5], index: 5, kind: input, shape index: {}]   ;;  %s964_s6 = inlined_call_operand.<no memory space> [shape: f32[1,1], index: 6, kind: input, shape index: {}]   ;;  %s965_s8 = inlined_call_operand.vmem [shape: f32[1,32], index: 8, kind: input, shape index: {}]   ;;  %s966_s9 = inlined_call_operand.vmem [shape: f32[1,32], index: 9, kind: input, shape index: {}]   ;;  %s967_s10 = inlined_call_operand.vmem [shape: f32[1,5], index: 10, kind: input, shape index: {}]   ;;  %s968_s11 = inlined_call_operand.vmem [shape: f32[1,5], index: 11, kind: input, shape index: {}]   ;;  %s969_s12 = inlined_call_operand.vmem [shape: f32[5,128], index: 12, kind: input, shape index: {}]   ;;  %s970_s13 = inlined_call_operand.vmem [shape: f32[1,128], index: 13, kind: input, shape index: {}]   ;;  %s971_s14 = inlined_call_operand.hbm [shape: f32[8,128], index: 14, kind: output, shape index: {}]   ;;  %s972_s7 = inlined_call_operand.<no memory space> [shape: f32[1,1], index: 7, kind: input, shape index: {}]  }
   0x1   :  { %v19_v0 = vstv %s964_s6  ;;  %v21_v1 = vstv %s972_s7 }
   0x2   :  { %20 = vst [vmem:[#allocation3] sm:$0x1] %v19_v0  ;;  %22 = vst [vmem:[#allocation4] sm:$0x1] %v21_v1 }
   0x3   :  { %v56_v2 = vld [vmem:[%s958_s0] sm:$0xff]  ;;  %vm57_vm0 = vcmask 39936  }
   0x4   :  { %23 = vsyncpa [#allocation6], 0  ;;  %v58_v3 = vsel %vm57_vm0, %v56_v2, 0.0  ;;  %v733_v5 = vmov 0   ;;  %v112_v18 = vld [vmem:[%s960_s2] sm:$0x1f] }
   0x5   :  { %59 = vadd.xlane.f32.xlu0 %v58_v3  ;;  %692 = vset.pattern.permute.xlu1 %v733_v5  ;;  %vm123_vm1 = vcmask 1044480   ;;  %v111_v19 = vld [vmem:[%s959_s1] sm:$0xff]  ;;  %v734_v20 = vmov 0.0   ;;  %vm735_vm2 = vmmov 0   ;;  %v736_v26 = vmov 2   ;;  %s740_s26 = smov 96  }
   0x6   :  { %619 = vmatprep.subr.mxu0 %v734_v20  ;;  %621 = vmatprep.mubr.msk.f32.mxu0 %vm735_vm2, %v734_v20  ;;  %v737_v27 = vmov 3   ;;  %v738_v40 = vmov 4   ;;  %v739_v41 = vmov 1   ;;  %v591_v42 = vld [vmem:[%s961_s3] ss:$0 sm:$0xff]  ;;  %s741_s27 = smov 64  }
   0x7   :  { %620 = vmatpush3.msk.msra.mxu0 %vm123_vm1, %v112_v18  ;;  %648 = vmatprep.mubr.msk.f32.mxu1 %vm735_vm2, %v734_v20  ;;  %s742_s3 = smov 32   ;;  %vm259_vm3 = vcmask 261120   ;;  %vm261_vm4 = vcmask 523264   ;;  %vm263_vm5 = vcmask 785408   ;;  %v290_v18 = vlaneseq }
   0x8   :  { %622 = vmatmul.mubr.msk.f32.vlgmr.msra.gmra.mrb[0].mxu0 %vm57_vm0, %v111_v19  ;;  %651 = vmatprep.subr.mxu0 %v734_v20 }
   0x9   :  { %v589_v4 = vld [vmem:[#allocation3] ss:$0 sm:$0xff]  ;;  %v590_v17 = vld [vmem:[#allocation4] ss:$0 sm:$0xff]  ;;  %653 = vmatprep.mubr.msk.f32.mxu0 %vm735_vm2, %v734_v20  ;;  %693 = vset.pattern.permute.xlu0 %v736_v26  ;;  %v291_v19 = vshrl.u32 %v290_v18, 7 }
   0xa   :  { %96 = vperm.xlu1 %692, %v589_v4  }
   0xb   :  { %v859_v20 = vsub.s32 0, %v291_v19 }
   0xe   :  { %107 = vperm.xlu1 %692, %v590_v17  }
  0x12   :  { %694 = vset.pattern.permute.xlu1 %v737_v27 }
  0x89   :  { %v97_v34 = vpop.permute.xlu1 %96 }
  0x8d   :  { %v108_v38 = vpop.permute.xlu1 %107 }
  0x92   :  { %v60_v6 = vpop.xlane.xlu0 %59 }
  0x93   :  { %v61_v7 = vrot.slane %v60_v6, 4 }
  0x95   :  { %v62_v8 = vadd.f32 %v61_v7, %v60_v6 }
  0x97   :  { %v63_v9 = vrot.slane %v62_v8, 2 }
  0x99   :  { %v64_v10 = vadd.f32 %v63_v9, %v62_v8 }
  0x9b   :  { %v65_v11 = vrot.slane %v64_v10, 1 }
  0x9d   :  { %v66_v12 = vadd.f32 %v65_v11, %v64_v10 }
  0x9f   :  { %674 = vpush %v66_v12 }
  0xd0   :  { %s675_s6 = spop %674 }
  0xd1   :  { %s68_s0 = smul.f32 0.025, %s675_s6 }
  0xd3   :  { %v69_v13 = vstv %s68_s0 }
  0xd4   :  { %v70_v14 = vsub.f32 %v56_v2, %v69_v13 }
  0xd6   :  { %v71_v15 = vmul.f32 %v70_v14, %v70_v14 }
  0xd8   :  { %v72_v16 = vsel %vm57_vm0, %v71_v15, 0.0 }
  0xd9   :  { %73 = vadd.xlane.f32.xlu0 %v72_v16 }
  0xdb   :  { %v193_v32 = vpop.f32.mrb[0].mxu0 }
  0xdc   :  { %v623_v33 = vpop.f32.mrb[1].mxu0  ;;  %v194_v43 = vadd.f32 %v591_v42, %v193_v32  ;;  %v354_v42 = vld [vmem:[%s962_s4 + $0x20] sm:$0xff] }
 0x166   :  { %v74_v21 = vpop.xlane.xlu0 %73 }
 0x167   :  { %v75_v22 = vrot.slane %v74_v21, 4 }
 0x169   :  { %v76_v23 = vadd.f32 %v75_v22, %v74_v21 }
 0x16b   :  { %v77_v24 = vrot.slane %v76_v23, 2 }
 0x16d   :  { %v78_v25 = vadd.f32 %v77_v24, %v76_v23 }
 0x16f   :  { %v79_v28 = vrot.slane %v78_v25, 1 }
 0x171   :  { %v80_v29 = vadd.f32 %v79_v28, %v78_v25 }
 0x173   :  { %676 = vpush %v80_v29 }
 0x1a4   :  { %s677_s1 = spop %676 }
 0x1a5   :  { %s82_s2 = smul.f32 0.025, %s677_s1 }
 0x1a7   :  { %s83_s22 = sadd.f32 1e-05, %s82_s2 }
 0x1a9   :  { %v84_v30 = vstv %s83_s22 }
 0x1aa   :  { %699 = vrsqrt.f32 %v84_v30 }
 0x1b4   :  { %v700_v31 = vpop.eup %699 }
 0x1b5   :  { %678 = vpush %v700_v31 }
 0x1e6   :  { %s679_s23 = spop %678 }
 0x1e7   :  { %v87_v35 = vstv %s679_s23 }
 0x1e8   :  { %v88_v36 = vmul.f32 %v87_v35, %v70_v14  ;;  %v350_v35 = vld [vmem:[%s962_s4] sm:$0xff] }
 0x1ea   :  { %v99_v37 = vmul.f32 %v97_v34, %v88_v36  ;;  %v351_v36 = vld [vmem:[%s962_s4 + $0x8] sm:$0xff] }
 0x1ec   :  { %v110_v39 = vadd.f32 %v108_v38, %v99_v37  ;;  %v352_v37 = vld [vmem:[%s962_s4 + $0x10] sm:$0xff]  ;;  %v743_v38 = vmov 0.0|0.0  }
 0x1ed   :  { %656 = vmatprep.subr.bf16.mxu1 %v743_v38 }
 0x1ee   :  { %211 = vperm.xlu1 %694, %v110_v39   ;;  %207 = vperm.xlu0 %693, %v110_v39  }
 0x1f2   :  { %695 = vset.pattern.permute.xlu1 %v738_v40  ;;  %698 = vset.pattern.permute.xlu0 %v738_v40  ;;  %v353_v40 = vld [vmem:[%s962_s4 + $0x18] sm:$0xff] }
 0x1f3   :  { %215 = vperm.xlu1 %695, %v110_v39  }
 0x1f7   :  { %696 = vset.pattern.permute.xlu1 %v739_v41  ;;  %v660_v41 = vpack.c.bf16 %v353_v40, %v352_v37  ;;  %v597_v40 = vld [vmem:[%s968_s11] ss:$0 sm:$0xff] }
 0x1f8   :  { %203 = vperm.xlu1 %696, %v110_v39  }
 0x1fc   :  { %697 = vset.pattern.permute.xlu1 %v733_v5 }
 0x26d   :  { %v208_v44 = vpop.permute.xlu0 %207  ;;  %v212_v46 = vpop.permute.xlu1 %211 }
 0x26e   :  { %v225_v45 = vmul.f32 %v208_v44, %v194_v43  ;;  %v235_v47 = vmul.f32 %v212_v46, %v194_v43  ;;  %v357_v46 = vld [vmem:[%s962_s4 + $0x38] sm:$0xff] }
 0x270   :  { %231 = vrot.lane.b32.xlu1 %v225_v45, %s740_s26 }
 0x272   :  { %v216_v48 = vpop.permute.xlu1 %215 }
 0x273   :  { %v245_v49 = vmul.f32 %v216_v48, %v194_v43 }
 0x274   :  { %241 = vrot.lane.b32.xlu1 %v235_v47, %s740_s26 }
 0x277   :  { %v204_v50 = vpop.permute.xlu1 %203 }
 0x278   :  { %237 = vrot.lane.b32.xlu1 %v235_v47, %s741_s27  ;;  %v219_v51 = vmul.f32 %v204_v50, %v194_v43 }
 0x27c   :  { %247 = vrot.lane.b32.xlu1 %v245_v49, %s741_s27 }
 0x280   :  { %199 = vperm.xlu1 %697, %v110_v39   ;;  %v657_v39 = vpack.c.bf16 %v351_v36, %v350_v35 }
 0x282   :  { %658 = vmatpush3.bf16.msra.mxu1 %v657_v39 }
 0x283   :  { %659 = vmatprep.subr.bf16.mxu1 %v743_v38 }
 0x284   :  { %221 = vrot.lane.b32.xlu1 %v219_v51, %s740_s26 }
 0x286   :  { %661 = vmatpush3.bf16.msra.mxu1 %v660_v41 }
 0x287   :  { %662 = vmatprep.subr.bf16.mxu1 %v743_v38 }
 0x288   :  { %227 = vrot.lane.b32.xlu1 %v225_v45, %s741_s27 }
 0x2e2   :  { %v232_v52 = vpop.permute.xlu1 %231 }
 0x2e3   :  { %v234_v54 = vadd.f32 %v232_v52, %v219_v51 }
 0x2e6   :  { %v242_v53 = vpop.permute.xlu1 %241 }
 0x2e7   :  { %v244_v57 = vadd.f32 %v242_v53, %v225_v45  ;;  %v356_v45 = vld [vmem:[%s962_s4 + $0x30] sm:$0xff] }
 0x2e8   :  { %v666_v47 = vpack.c.bf16 %v357_v46, %v356_v45  ;;  %v598_v45 = vld [vmem:[%s970_s13] ss:$0 sm:$0xff] }
 0x2ea   :  { %v238_v55 = vpop.permute.xlu1 %237 }
 0x2eb   :  { %v240_v56 = vadd.f32 %v238_v55, %v234_v54  ;;  %v358_v54 = vld [vmem:[%s962_s4 + $0x40] sm:$0xff]  ;;  %v359_v55 = vld [vmem:[%s962_s4 + $0x48] sm:$0xff] }
 0x2ed   :  { %252 = vrot.lane.b32.xlu1 %v240_v56, %s742_s3  ;;  %v669_v56 = vpack.c.bf16 %v359_v55, %v358_v54 }
 0x2ee   :  { %v248_v58 = vpop.permute.xlu1 %247 }
 0x2ef   :  { %v250_v59 = vadd.f32 %v248_v58, %v244_v57  ;;  %v360_v57 = vld [vmem:[%s962_s4 + $0x50] sm:$0xff]  ;;  %v361_v58 = vld [vmem:[%s962_s4 + $0x58] sm:$0xff] }
 0x2f1   :  { %256 = vrot.lane.b32.xlu0 %v250_v59, %s741_s27  ;;  %v672_v59 = vpack.c.bf16 %v361_v58, %v360_v57 }
 0x2ff   :  { %v200_v60 = vpop.permute.xlu1 %199 }
 0x300   :  { %v218_v63 = vmul.f32 %v200_v60, %v194_v43  ;;  %v355_v43 = vld [vmem:[%s962_s4 + $0x28] sm:$0xff]  ;;  %v315_v60 = vld [vmem:[%s965_s8] sm:$0x1] }
 0x301   :  { %v663_v44 = vpack.c.bf16 %v355_v43, %v354_v42 }
 0x303   :  { %v222_v61 = vpop.permute.xlu1 %221  ;;  %664 = vmatpush3.bf16.msra.mxu1 %v663_v44 }
 0x304   :  { %v224_v0 = vadd.f32 %v222_v61, %v218_v63  ;;  %665 = vmatprep.subr.bf16.mxu1 %v743_v38 }
 0x307   :  { %v228_v62 = vpop.permute.xlu1 %227  ;;  %667 = vmatpush3.bf16.msra.mxu1 %v666_v47 }
 0x308   :  { %v230_v2 = vadd.f32 %v228_v62, %v224_v0  ;;  %668 = vmatprep.subr.bf16.mxu1 %v743_v38  ;;  %v326_v62 = vld [vmem:[%s966_s9] sm:$0x1] }
 0x309   :  { %v331_v0 = vrot.slane %v326_v62, %v859_v20 }
 0x30b   :  { %670 = vmatpush3.bf16.msra.mxu1 %v669_v56 }
 0x30c   :  { %671 = vmatprep.subr.bf16.mxu1 %v743_v38  ;;  %v596_v38 = vld [vmem:[%s967_s10] ss:$0 sm:$0xff]  ;;  %s744_s10 = smov [#allocation5]  }
 0x30d   :  { %s581_s11 = sshll.u32 %s744_s10, 4  ;;  %s582_s11 = int_to_ptr.vmem [resolvable:$true] %s581_s11 }
 0x30e   :  { %s709_s20 = scalar_lea.vmem %s582_s11, 128  ;;  %p714_p1 = scmp.lt.s32.totalorder %s582_s11, %s582_s11 }
 0x30f   :  { %673 = vmatpush3.bf16.msra.mxu1 %v672_v59  ;;  %p710_p0 = scmp.ne.s32.totalorder %s582_s11, %s709_s20  ;;  %p715_p2 = scmp.lt.s32.totalorder %s709_s20, %s709_s20 }
 0x311   :  { %p716_p3 = por %p715_p2, %p714_p1 }
 0x313   :  { %p717_p4 = pnand %p716_p3, %p710_p0 }
 0x35f   :  { %v253_v1 = vpop.permute.xlu1 %252 }
 0x360   :  { %v260_v3 = vsel %vm259_vm3, %v230_v2, %v253_v1 }
 0x363   :  { %v257_v4 = vpop.permute.xlu0 %256 }
 0x364   :  { %v262_v5 = vsel %vm261_vm4, %v260_v3, %v257_v4 }
 0x365   :  { %v264_v6 = vsel %vm263_vm5, %v262_v5, 0.0 }
 0x366   :  { %v265_v7 = vrot.slane %v264_v6, 4 }
 0x368   :  { %v266_v8 = vadd.f32 %v265_v7, %v264_v6 }
 0x36a   :  { %v267_v9 = vrot.slane %v266_v8, 2 }
 0x36c   :  { %v268_v10 = vadd.f32 %v267_v9, %v266_v8 }
 0x36e   :  { %v269_v11 = vrot.slane %v268_v10, 1 }
 0x370   :  { %v270_v12 = vadd.f32 %v269_v11, %v268_v10 }
 0x372   :  { %276 = vrot.lane.b32.xlu0 %v270_v12, %s741_s27  ;;  %272 = vrot.lane.b32.xlu1 %v270_v12, %s740_s26 }
 0x3e4   :  { %v273_v13 = vpop.permute.xlu1 %272  ;;  %v277_v15 = vpop.permute.xlu0 %276 }
 0x3e5   :  { %v275_v14 = vadd.f32 %v273_v13, %v270_v12  ;;  %v482_v13 = vld [vmem:[%s969_s12] sm:$0x1f] }
 0x3e6   :  { %652 = vmatpush3.msk.msra.mxu0 %vm123_vm1, %v482_v13 }
 0x3e7   :  { %v279_v16 = vadd.f32 %v277_v15, %v275_v14  ;;  %v594_v14 = vld [vmem:[%s963_s5] ss:$0 sm:$0xff] }
 0x3e9   :  { %v280_v17 = vmul.f32 0.041666668, %v279_v16 }
 0x3eb   :  { %285 = vrot.lane.b32.xlu0 %v280_v17, %s741_s27  ;;  %282 = vrot.lane.b32.xlu1 %v280_v17, %s742_s3 }
 0x45d   :  { %v286_v21 = vpop.permute.xlu0 %285  ;;  %v283_v22 = vpop.permute.xlu1 %282 }
 0x45e   :  { %v288_v23 = vsel %vm259_vm3, %v280_v17, %v283_v22 }
 0x45f   :  { %v289_v24 = vsel %vm261_vm4, %v288_v23, %v286_v21 }
 0x460   :  { %v293_v25 = vrot.slane %v289_v24, %v859_v20 }
 0x462   :  { %v864_v26 = vsub.f32 %v262_v5, %v293_v25 }
 0x464   :  { %v295_v27 = vmul.f32 %v864_v26, %v864_v26 }
 0x466   :  { %v296_v28 = vsel %vm263_vm5, %v295_v27, 0.0 }
 0x467   :  { %v297_v29 = vrot.slane %v296_v28, 4 }
 0x469   :  { %v298_v30 = vadd.f32 %v297_v29, %v296_v28 }
 0x46b   :  { %v299_v31 = vrot.slane %v298_v30, 2 }
 0x46d   :  { %v300_v32 = vadd.f32 %v299_v31, %v298_v30 }
 0x46f   :  { %v301_v33 = vrot.slane %v300_v32, 1 }
 0x471   :  { %v302_v34 = vadd.f32 %v301_v33, %v300_v32 }
 0x473   :  { %308 = vrot.lane.b32.xlu0 %v302_v34, %s741_s27  ;;  %304 = vrot.lane.b32.xlu1 %v302_v34, %s740_s26 }
 0x4e5   :  { %v305_v48 = vpop.permute.xlu1 %304  ;;  %v309_v50 = vpop.permute.xlu0 %308 }
 0x4e6   :  { %v307_v49 = vadd.f32 %v305_v48, %v302_v34 }
 0x4e8   :  { %v311_v51 = vadd.f32 %v309_v50, %v307_v49 }
 0x4ea   :  { %v312_v52 = vmul.f32 0.041666668, %v311_v51 }
 0x4ec   :  { %v313_v53 = vadd.f32 1e-05, %v312_v52 }
 0x4ee   :  { %701 = vrsqrt.f32 %v313_v53 }
 0x4f8   :  { %v702_v61 = vpop.eup %701 }
 0x4f9   :  { %v316_v63 = vmul.f32 %v702_v61, %v315_v60 }
 0x4fb   :  { %321 = vrot.lane.b32.xlu0 %v316_v63, %s741_s27  ;;  %318 = vrot.lane.b32.xlu1 %v316_v63, %s742_s3 }
 0x4ff   :  { %332 = vrot.lane.b32.xlu1 %v331_v0, %s742_s3  ;;  %335 = vrot.lane.b32.xlu0 %v331_v0, %s741_s27 }
 0x56d   :  { %v322_v1 = vpop.permute.xlu0 %321  ;;  %v319_v2 = vpop.permute.xlu1 %318 }
 0x56e   :  { %v324_v3 = vsel %vm259_vm3, %v316_v63, %v319_v2 }
 0x56f   :  { %v325_v4 = vsel %vm261_vm4, %v324_v3, %v322_v1 }
 0x570   :  { %v343_v5 = vrot.slane %v325_v4, %v859_v20 }
 0x571   :  { %v333_v6 = vpop.permute.xlu1 %332  ;;  %v336_v7 = vpop.permute.xlu0 %335 }
 0x572   :  { %v338_v8 = vsel %vm259_vm3, %v326_v62, %v333_v6  ;;  %v344_v10 = vmul.f32 %v343_v5, %v864_v26 }
 0x573   :  { %v339_v9 = vsel %vm261_vm4, %v338_v8, %v336_v7 }
 0x574   :  { %v348_v11 = vrot.slane %v339_v9, %v859_v20 }
 0x576   :  { %v349_v12 = vadd.f32 %v348_v11, %v344_v10 }
 0x578   :  { %649 = vmatmul.mubr.msk.f32.vlgmr.msra.gmra.mrb[0].mxu1 %vm263_vm5, %v349_v12 }
 0x64b   :  { %v438_v15 = vpop.f32.mrb[0].mxu1 }
 0x64c   :  { %v439_v16 = vadd.f32 %v594_v14, %v438_v15  ;;  %v650_v17 = vpop.f32.mrb[1].mxu1 }
 0x64e   :  { %v442_v18 = vsel %vm57_vm0, %v439_v16, 0.0 }
 0x64f   :  { %v443_v19 = vrot.slane %v442_v18, 4 }
 0x651   :  { %v444_v20 = vadd.f32 %v443_v19, %v442_v18 }
 0x653   :  { %v445_v21 = vrot.slane %v444_v20, 2 }
 0x655   :  { %v446_v22 = vadd.f32 %v445_v21, %v444_v20 }
 0x657   :  { %v447_v23 = vrot.slane %v446_v22, 1 }
 0x659   :  { %v448_v24 = vadd.f32 %v447_v23, %v446_v22 }
 0x65b   :  { %v449_v25 = vmul.f32 0.125, %v448_v24 }
 0x65d   :  { %v450_v26 = vsub.f32 %v439_v16, %v449_v25 }
 0x65f   :  { %v451_v27 = vmul.f32 %v450_v26, %v450_v26 }
 0x661   :  { %v452_v28 = vsel %vm57_vm0, %v451_v27, 0.0 }
 0x662   :  { %v453_v29 = vrot.slane %v452_v28, 4 }
 0x664   :  { %v454_v30 = vadd.f32 %v453_v29, %v452_v28 }
 0x666   :  { %v455_v31 = vrot.slane %v454_v30, 2 }
 0x668   :  { %v456_v32 = vadd.f32 %v455_v31, %v454_v30 }
 0x66a   :  { %v457_v33 = vrot.slane %v456_v32, 1 }
 0x66c   :  { %v458_v34 = vadd.f32 %v457_v33, %v456_v32 }
 0x66e   :  { %v459_v35 = vmul.f32 0.125, %v458_v34 }
 0x670   :  { %v460_v36 = vadd.f32 1e-05, %v459_v35 }
 0x672   :  { %703 = vrsqrt.f32 %v460_v36 }
 0x67c   :  { %v704_v37 = vpop.eup %703 }
 0x67d   :  { %v462_v39 = vmul.f32 %v704_v37, %v450_v26 }
 0x67f   :  { %v470_v41 = vmul.f32 %v596_v38, %v462_v39 }
 0x681   :  { %v478_v42 = vadd.f32 %v597_v40, %v470_v41 }
 0x683   :  { %v479_v43 = vmax.f32 %v478_v42, 0.0 }
 0x685   :  { %480 = vst.msk [vmem:[#allocation2] sm:$0xff] %vm57_vm0, %v479_v43 }
 0x68c   :  { %v481_v44 = vld [vmem:[#allocation2] sm:$0xff] }
 0x68d   :  { %654 = vmatmul.mubr.msk.f32.vlgmr.msra.gmra.mrb[2].mxu0 %vm57_vm0, %v481_v44 }
 0x760   :  { %v564_v46 = vpop.f32.mrb[2].mxu0 }
 0x761   :  { %v565_v47 = vadd.f32 %v598_v45, %v564_v46  ;;  %v655_v48 = vpop.f32.mrb[3].mxu0 }
 0x763   :  { %v601_v49 = vmul.f32 -1.442695, %v565_v47 }
 0x765   :  { %705 = vpow2.f32 %v601_v49 }
 0x76f   :  { %v706_v50 = vpop.eup %705 }
 0x770   :  { %v571_v51 = vadd.f32 1.0, %v706_v50 }
 0x772   :  { %707 = vrcp.f32 %v571_v51 }
 0x77c   :  { %v708_v52 = vpop.eup %707 }
 0x77d   :  { %574 = vst [vmem:[#allocation5] sm:$0xff] %v708_v52 }
 0x77e   :  { %720 = shalt.err (!%p717_p4)
}
 0x77f   :  { %s721_s1 = scalar_lea.hbm %s971_s14, 128 }
 0x780   :  { %p722_p5 = scmp.ne.s32.totalorder %s971_s14, %s721_s1  ;;  %p725_p6 = scmp.lt.u32.totalorder %s721_s1, %s971_s14 }
 0x782   :  { %p727_p7 = pnand %p725_p6, %p722_p5 }
 0x784   :  { %730 = shalt.err (!%p727_p7)
}
 0x785   :  { %584 = dma.vmem_to_hbm [thread:$0]  %s582_s11, 128, %s971_s14, [#allocation6]  }
 0x786   :  { %731 = dma.done.wait [#allocation6], 128  }
 0x787   :  { %732 = vsyncadd [#allocation6], 4294967168 }
 0x788   :  { %588 = vsyncpa [#allocation6], 1 }

</bundles_post_ra>
